<compile_context>
chip_gen: v6e
topology: v6e:2x2x1
jax: 0.10.0
libtpu: 0.0.40
codegen_flags: <defaults>
</compile_context>

<pallas_src>
import functools

import jax
import jax.numpy as jnp
from jax.experimental import pallas as pl
from jax.experimental.pallas import tpu as pltpu

LANE = 128


def mlp_kernel(x_ref, w1_ref, b1_ref, w2_ref, b2_ref, w3_ref, b3_ref, o_ref):
    """Fused 3-layer MLP: (matmul + bias + tanh) x2, then the linear head."""
    cd = w1_ref.dtype  # compute dtype for MXU operands (bf16 by default)
    x = x_ref[...].astype(cd)  # in-kernel cast: hides under the x-tile DMA
    h1 = jnp.tanh(
        jnp.dot(x, w1_ref[...], preferred_element_type=jnp.float32) + b1_ref[...]
    )
    h2 = jnp.tanh(
        jnp.dot(h1.astype(cd), w2_ref[...], preferred_element_type=jnp.float32)
        + b2_ref[...]
    )
    out = (
        jnp.dot(h2.astype(cd), w3_ref[...], preferred_element_type=jnp.float32)
        + b3_ref[...]
    )
    o_ref[...] = out.astype(o_ref.dtype)


def _round_up(n, m):
    return ((n + m - 1) // m) * m


def _num_tc_per_chip():
    """2 TensorCores per chip only on v7x-class parts; 1 on v5e/v6e."""
    try:
        kind = jax.devices()[0].device_kind.lower()
    except Exception:
        return 1
    return 2 if "v7" in kind else 1


def _choose_block_b(B, target=4096):
    """Large batch tiles to amortize the ~0.35 us/step grid overhead.

    Only on 2-TC chips (v7x) do we cap the tile so the grid has >= 2 balanced
    steps and the "parallel" axis can shard across both cores; on single-TC
    v5e/v6e a single large tile covers small-to-medium B.
    """
    if B <= 8:
        return B  # block dim == full array dim (always legal)
    bb = min(target, B)
    if _num_tc_per_chip() >= 2 and B >= 64:
        bb = min(bb, _round_up((B + 1) // 2, 8))
    return _round_up(bb, 8)


def prepare_params(w1, b1, w2, b2, w3, b3, compute_dtype=jnp.bfloat16):
    """Pad hidden dims to 128 lanes and cast weights to the compute dtype,
    once, outside the per-call path. The output dim O is NOT padded."""
    F, H1 = w1.shape
    H2 = w2.shape[1]
    O = w3.shape[1]
    H1p = _round_up(H1, LANE)
    H2p = _round_up(H2, LANE)
    cd = compute_dtype
    f32 = jnp.float32

    w1p = jnp.zeros((F, H1p), cd).at[:, :H1].set(w1.astype(cd))
    b1p = jnp.zeros((1, H1p), f32).at[:, :H1].set(b1.reshape(1, H1).astype(f32))
    w2p = jnp.zeros((H1p, H2p), cd).at[:H1, :H2].set(w2.astype(cd))
    b2p = jnp.zeros((1, H2p), f32).at[:, :H2].set(b2.reshape(1, H2).astype(f32))
    w3p = jnp.zeros((H2p, O), cd).at[:H2, :].set(w3.astype(cd))
    b3p = b3.reshape(1, O).astype(f32)
    return w1p, b1p, w2p, b2p, w3p, b3p


@functools.partial(jax.jit, static_argnames=("block_b",))
def mlp_forward(x, w1p, b1p, w2p, b2p, w3p, b3p, *, block_b=None):
    B, F = x.shape
    H1p = w1p.shape[1]
    H2p = w2p.shape[1]
    O = w3p.shape[1]

    if block_b is None:
        block_b = _choose_block_b(B)

    grid = (pl.cdiv(B, block_b),)  # ragged last block handles the batch tail

    wspec = lambda shape: pl.BlockSpec(shape, lambda i: (0, 0))

    out = pl.pallas_call(
        mlp_kernel,
        out_shape=jax.ShapeDtypeStruct((B, O), jnp.float32),
        grid_spec=pltpu.PrefetchScalarGridSpec(
            num_scalar_prefetch=0,
            grid=grid,
            in_specs=[
                pl.BlockSpec((block_b, F), lambda i: (i, 0)),  # x tile over batch
                wspec((F, H1p)),
                wspec((1, H1p)),
                wspec((H1p, H2p)),
                wspec((1, H2p)),
                wspec((H2p, O)),
                wspec((1, O)),
            ],
            out_specs=pl.BlockSpec((block_b, O), lambda i: (i, 0)),
        ),
        compiler_params=pltpu.CompilerParams(
            dimension_semantics=("parallel",),
            vmem_limit_bytes=32 * 1024 * 1024,  # headroom on v5e's 16 MiB default
        ),
    )(x, w1p, b1p, w2p, b2p, w3p, b3p)
    return out  # f32, matching the PyTorch module's output dtype


def init_linear(key, fan_in, fan_out, dtype=jnp.float32):
    """PyTorch nn.Linear default init: U(-k, k), k = 1/sqrt(fan_in)."""
    kw, kb = jax.random.split(key)
    bound = 1.0 / jnp.sqrt(fan_in)
    # Stored as (in, out): transpose of torch's (out, in); forward uses x @ W.
    w = jax.random.uniform(kw, (fan_in, fan_out), dtype, minval=-bound, maxval=bound)
    b = jax.random.uniform(kb, (1, fan_out), dtype, minval=-bound, maxval=bound)
    return w, b


def reference_forward(x, w1, b1, w2, b2, w3, b3):
    h1 = jnp.tanh(x @ w1 + b1)
    h2 = jnp.tanh(h1 @ w2 + b2)
    return h2 @ w3 + b3


if __name__ == "__main__":
    # Shapes consistent with the module: 16 input features, 4 output targets.
    F, H1, H2, O = 16, 100, 40, 4

    key = jax.random.PRNGKey(0)
    kx, k1, k2, k3 = jax.random.split(key, 4)

    w1, b1 = init_linear(k1, F, H1)
    w2, b2 = init_linear(k2, H1, H2)
    w3, b3 = init_linear(k3, H2, O)

    params_f32 = prepare_params(w1, b1, w2, b2, w3, b3, compute_dtype=jnp.float32)
    params_bf16 = prepare_params(w1, b1, w2, b2, w3, b3, compute_dtype=jnp.bfloat16)

    # 1) small batch, f32 operands, tight parity check
    x8 = jax.random.normal(kx, (8, F), jnp.float32)
    out8 = jax.block_until_ready(mlp_forward(x8, *params_f32))
    ref8 = reference_forward(x8, w1, b1, w2, b2, w3, b3)
    assert out8.shape == (8, O), out8.shape
    assert jnp.allclose(out8, ref8, atol=1e-5, rtol=1e-5), "f32 mismatch (B=8)"

    # 2) batch not a multiple of 8 (exercises the ragged last block path)
    x37 = jax.random.normal(kx, (37, F), jnp.float32)
    out37 = jax.block_until_ready(mlp_forward(x37, *params_f32))
    ref37 = reference_forward(x37, w1, b1, w2, b2, w3, b3)
    assert out37.shape == (37, O), out37.shape
    assert jnp.allclose(out37, ref37, atol=1e-5, rtol=1e-5), "f32 mismatch (B=37)"

    # 3) default bf16-MXU-operand path (f32 accumulation), looser tolerance
    x300 = jax.random.normal(kx, (300, F), jnp.float32)
    out_bf = jax.block_until_ready(mlp_forward(x300, *params_bf16))
    ref300 = reference_forward(x300, w1, b1, w2, b2, w3, b3)
    assert out_bf.shape == (300, O), out_bf.shape
    assert out_bf.dtype == jnp.float32
    assert jnp.isfinite(out_bf).all()
    assert jnp.allclose(out_bf, ref300, atol=1e-1, rtol=1e-1), "bf16 mismatch (B=300)"

    print("KERNEL_OK")
</pallas_src>

<mosaic_0001>
module attributes {stable_mosaic.version = 11 : i64} {
  func.func @mlp_kernel(%arg0: i32, %arg1: memref<8x16xf32, #tpu.memory_space<vmem>>, %arg2: memref<16x128xf32, #tpu.memory_space<vmem>>, %arg3: memref<1x128xf32, #tpu.memory_space<vmem>>, %arg4: memref<128x128xf32, #tpu.memory_space<vmem>>, %arg5: memref<1x128xf32, #tpu.memory_space<vmem>>, %arg6: memref<128x4xf32, #tpu.memory_space<vmem>>, %arg7: memref<1x4xf32, #tpu.memory_space<vmem>>, %arg8: memref<8x4xf32, #tpu.memory_space<vmem>>) attributes {dimension_semantics = [#tpu.dimension_semantics<parallel>], iteration_bounds = array<i64: 1>, scalar_prefetch = 0 : i64, scratch_operands = 0 : i64, tpu.core_type = #tpu.core_type<tc>, window_params = [{transform_indices = @transform_0, window_bounds = array<i64: 8, 16>}, {pipeline_mode = #tpu.pipeline_mode<synchronous>, transform_indices = @transform_1, window_bounds = array<i64: 16, 128>}, {pipeline_mode = #tpu.pipeline_mode<synchronous>, transform_indices = @transform_2, window_bounds = array<i64: 1, 128>}, {pipeline_mode = #tpu.pipeline_mode<synchronous>, transform_indices = @transform_3, window_bounds = array<i64: 128, 128>}, {pipeline_mode = #tpu.pipeline_mode<synchronous>, transform_indices = @transform_4, window_bounds = array<i64: 1, 128>}, {pipeline_mode = #tpu.pipeline_mode<synchronous>, transform_indices = @transform_5, window_bounds = array<i64: 128, 4>}, {pipeline_mode = #tpu.pipeline_mode<synchronous>, transform_indices = @transform_6, window_bounds = array<i64: 1, 4>}, {transform_indices = @transform_7, window_bounds = array<i64: 8, 4>}]} {
    %c0 = arith.constant 0 : index
    %c0_0 = arith.constant 0 : index
    %0 = vector.load %arg1[%c0, %c0_0] : memref<8x16xf32, #tpu.memory_space<vmem>>, vector<8x16xf32>
    %c0_1 = arith.constant 0 : index
    %c0_2 = arith.constant 0 : index
    %1 = vector.load %arg2[%c0_1, %c0_2] : memref<16x128xf32, #tpu.memory_space<vmem>>, vector<16x128xf32>
    %cst = arith.constant dense<0.000000e+00> : vector<8x128xf32>
    %2 = tpu.matmul %0, %1, %cst {dimension_numbers = #tpu.dot_dimension_numbers<[1], [0], [0], [1], [0, 0, 1, 1], [], []>} : vector<8x16xf32>, vector<16x128xf32>, vector<8x128xf32> -> vector<8x128xf32>
    %c0_3 = arith.constant 0 : index
    %c0_4 = arith.constant 0 : index
    %3 = vector.load %arg3[%c0_3, %c0_4] : memref<1x128xf32, #tpu.memory_space<vmem>>, vector<1x128xf32>
    %4 = vector.broadcast %3 : vector<1x128xf32> to vector<8x128xf32>
    %5 = arith.addf %2, %4 : vector<8x128xf32>
    %6 = math.tanh %5 : vector<8x128xf32>
    %c0_5 = arith.constant 0 : index
    %c0_6 = arith.constant 0 : index
    %7 = vector.load %arg4[%c0_5, %c0_6] : memref<128x128xf32, #tpu.memory_space<vmem>>, vector<128x128xf32>
    %cst_7 = arith.constant dense<0.000000e+00> : vector<8x128xf32>
    %8 = tpu.matmul %6, %7, %cst_7 {dimension_numbers = #tpu.dot_dimension_numbers<[1], [0], [0], [1], [0, 0, 1, 1], [], []>} : vector<8x128xf32>, vector<128x128xf32>, vector<8x128xf32> -> vector<8x128xf32>
    %c0_8 = arith.constant 0 : index
    %c0_9 = arith.constant 0 : index
    %9 = vector.load %arg5[%c0_8, %c0_9] : memref<1x128xf32, #tpu.memory_space<vmem>>, vector<1x128xf32>
    %10 = vector.broadcast %9 : vector<1x128xf32> to vector<8x128xf32>
    %11 = arith.addf %8, %10 : vector<8x128xf32>
    %12 = math.tanh %11 : vector<8x128xf32>
    %c0_10 = arith.constant 0 : index
    %c0_11 = arith.constant 0 : index
    %13 = vector.load %arg6[%c0_10, %c0_11] : memref<128x4xf32, #tpu.memory_space<vmem>>, vector<128x4xf32>
    %cst_12 = arith.constant dense<0.000000e+00> : vector<8x4xf32>
    %14 = tpu.matmul %12, %13, %cst_12 {dimension_numbers = #tpu.dot_dimension_numbers<[1], [0], [0], [1], [0, 0, 1, 1], [], []>} : vector<8x128xf32>, vector<128x4xf32>, vector<8x4xf32> -> vector<8x4xf32>
    %c0_13 = arith.constant 0 : index
    %c0_14 = arith.constant 0 : index
    %15 = vector.load %arg7[%c0_13, %c0_14] : memref<1x4xf32, #tpu.memory_space<vmem>>, vector<1x4xf32>
    %16 = vector.broadcast %15 : vector<1x4xf32> to vector<8x4xf32>
    %17 = arith.addf %14, %16 : vector<8x4xf32>
    %c0_15 = arith.constant 0 : index
    %c0_16 = arith.constant 0 : index
    %18 = vector.load %arg8[%c0_15, %c0_16] : memref<8x4xf32, #tpu.memory_space<vmem>>, vector<8x4xf32>
    tpu.vector_store %arg8[%c0_15, %c0_16], %17 {strides = array<i32>} : memref<8x4xf32, #tpu.memory_space<vmem>>, vector<8x4xf32>,
    return
  }
  func.func @transform_0(%arg0: i32) -> (i32, i32) {
    %c0_i32 = arith.constant 0 : i32
    %c0_i32_0 = arith.constant 0 : i32
    return %arg0, %c0_i32 : i32, i32
  }
  func.func @transform_1(%arg0: i32) -> (i32, i32) {
    %c0_i32 = arith.constant 0 : i32
    %c0_i32_0 = arith.constant 0 : i32
    %c0_i32_1 = arith.constant 0 : i32
    return %c0_i32, %c0_i32_0 : i32, i32
  }
  func.func @transform_2(%arg0: i32) -> (i32, i32) {
    %c0_i32 = arith.constant 0 : i32
    %c0_i32_0 = arith.constant 0 : i32
    %c0_i32_1 = arith.constant 0 : i32
    return %c0_i32, %c0_i32_0 : i32, i32
  }
  func.func @transform_3(%arg0: i32) -> (i32, i32) {
    %c0_i32 = arith.constant 0 : i32
    %c0_i32_0 = arith.constant 0 : i32
    %c0_i32_1 = arith.constant 0 : i32
    return %c0_i32, %c0_i32_0 : i32, i32
  }
  func.func @transform_4(%arg0: i32) -> (i32, i32) {
    %c0_i32 = arith.constant 0 : i32
    %c0_i32_0 = arith.constant 0 : i32
    %c0_i32_1 = arith.constant 0 : i32
    return %c0_i32, %c0_i32_0 : i32, i32
  }
  func.func @transform_5(%arg0: i32) -> (i32, i32) {
    %c0_i32 = arith.constant 0 : i32
    %c0_i32_0 = arith.constant 0 : i32
    %c0_i32_1 = arith.constant 0 : i32
    return %c0_i32, %c0_i32_0 : i32, i32
  }
  func.func @transform_6(%arg0: i32) -> (i32, i32) {
    %c0_i32 = arith.constant 0 : i32
    %c0_i32_0 = arith.constant 0 : i32
    %c0_i32_1 = arith.constant 0 : i32
    return %c0_i32, %c0_i32_0 : i32, i32
  }
  func.func @transform_7(%arg0: i32) -> (i32, i32) {
    %c0_i32 = arith.constant 0 : i32
    %c0_i32_0 = arith.constant 0 : i32
    return %arg0, %c0_i32 : i32, i32
  }
}

</mosaic_0001>

<bundles_post_ra>
// kernel: mlp_forward.1
= control target key start
LH: loop header
LB: loop body
LE: loop exit
PB: predicated region body
PF: predicated region fallthrough
CT: control target
= control target key end

     0   :  { %12 = vsyncpa [#allocation3], 0  ;;  %s704_s0 = inlined_call_operand.vmem [shape: f32[8,16], index: 0, kind: input, shape index: {}]   ;;  %s705_s1 = inlined_call_operand.hbm [shape: f32[16,128], index: 1, kind: input, shape index: {}]   ;;  %s706_s2 = inlined_call_operand.vmem [shape: f32[1,128], index: 2, kind: input, shape index: {}]   ;;  %s707_s3 = inlined_call_operand.vmem [shape: f32[128,128], index: 3, kind: input, shape index: {}]   ;;  %s708_s4 = inlined_call_operand.hbm [shape: f32[1,128], index: 4, kind: input, shape index: {}]   ;;  %s709_s5 = inlined_call_operand.vmem [shape: f32[128,4], index: 5, kind: input, shape index: {}]   ;;  %s710_s6 = inlined_call_operand.vmem [shape: f32[1,4], index: 6, kind: input, shape index: {}]   ;;  %s711_s7 = inlined_call_operand.vmem [shape: f32[8,4], index: 7, kind: output, shape index: {}]  }
   0x1   :  { %13 = vsyncpa [#allocation5], 0  ;;  %s504_s24 = smov [#allocation2]  }
   0x2   :  { %s21_s25 = sshll.u32 %s504_s24, 4  ;;  %s22_s25 = int_to_ptr.vmem [resolvable:$true] %s21_s25 }
   0x3   :  { %s468_s26 = scalar_lea.vmem %s22_s25, 256  ;;  %p473_p1 = scmp.lt.s32.totalorder %s22_s25, %s22_s25 }
   0x4   :  { %p469_p0 = scmp.ne.s32.totalorder %s22_s25, %s468_s26  ;;  %p474_p2 = scmp.lt.s32.totalorder %s468_s26, %s468_s26 }
   0x6   :  { %p475_p3 = por %p474_p2, %p473_p1 }
   0x8   :  { %p476_p4 = pnand %p475_p3, %p469_p0 }
   0xa   :  { %479 = shalt.err (!%p476_p4)
}
   0xb   :  { %s505_s27 = smov 128   ;;  %s506_s28 = smov 8  }
   0xc   :  { %27 = dma.hbm_to_vmem [thread:$0]  %s705_s1, 256, %s22_s25, [#allocation3], %s505_s27, %s505_s27, %s506_s28  }
   0xd   :  { %s507_s8 = smov [#allocation4]  }
   0xe   :  { %s38_s9 = sshll.u32 %s507_s8, 4  ;;  %s39_s9 = int_to_ptr.vmem [resolvable:$true] %s38_s9 }
   0xf   :  { %s488_s10 = scalar_lea.vmem %s39_s9, 16  ;;  %s492_s11 = scalar_lea.vmem %s39_s9, 32 }
  0x10   :  { %p489_p5 = scmp.ne.s32.totalorder %s39_s9, %s488_s10  ;;  %p493_p6 = scmp.lt.s32.totalorder %s39_s9, %s39_s9 }
  0x11   :  { %p494_p7 = scmp.lt.s32.totalorder %s492_s11, %s488_s10 }
  0x13   :  { %p495_p8 = por %p494_p7, %p493_p6 }
  0x15   :  { %p496_p9 = pnand %p495_p8, %p489_p5 }
  0x17   :  { %499 = shalt.err (!%p496_p9)
}
  0x18   :  { %41 = dma.hbm_to_vmem [thread:$0]  %s708_s4, 16, %s39_s9, [#allocation5]  }
  0x19   :  { %500 = dma.done.wait [#allocation3], 256  }
  0x1a   :  { %501 = vsyncadd [#allocation3], 4294967040 }
  0x1b   :  { %502 = dma.done.wait [#allocation5], 16  }
  0x1c   :  { %503 = vsyncadd [#allocation5], 4294967280  ;;  %v508_v0 = vmov 0.0   ;;  %vm509_vm0 = vmmov 0   ;;  %v54_v1 = vld [vmem:[#allocation2 + $0x8] sm:$0xff]  ;;  %v53_v2 = vld [vmem:[#allocation2] sm:$0xff] }
  0x1d   :  { %373 = vmatprep.subr.mxu0 %v508_v0  ;;  %377 = vmatprep.mubr.msk.f32.mxu0 %vm509_vm0, %v508_v0  ;;  %v52_v3 = vld [vmem:[%s704_s0] sm:$0xff]  ;;  %vm62_vm1 = vcmask 130048   ;;  %v152_v4 = vld [vmem:[%s707_s3 + $0x78] sm:$0xff]  ;;  %v151_v5 = vld [vmem:[%s707_s3 + $0x70] sm:$0xff]  ;;  %vm324_vm2 = vcmask 31744  }
  0x1e   :  { %380 = vmatprep.subr.mxu1 %v508_v0  ;;  %412 = vmatprep.mubr.msk.f32.mxu1 %vm509_vm0, %v508_v0  ;;  %v150_v6 = vld [vmem:[%s707_s3 + $0x68] sm:$0xff]  ;;  %v149_v7 = vld [vmem:[%s707_s3 + $0x60] sm:$0xff]  ;;  %v148_v8 = vld [vmem:[%s707_s3 + $0x58] sm:$0xff] }
  0x1f   :  { %374 = vmatpush3.msra.mxu0 %v54_v1  ;;  %381 = vmatpush3.msra.mxu1 %v152_v4  ;;  %v147_v9 = vld [vmem:[%s707_s3 + $0x50] sm:$0xff]  ;;  %v146_v10 = vld [vmem:[%s707_s3 + $0x48] sm:$0xff]  ;;  %v145_v11 = vld [vmem:[%s707_s3 + $0x40] sm:$0xff] }
  0x20   :  { %375 = vmatprep.subr.mxu0 %v508_v0  ;;  %382 = vmatprep.subr.mxu1 %v508_v0  ;;  %v144_v12 = vld [vmem:[%s707_s3 + $0x38] sm:$0xff]  ;;  %v143_v13 = vld [vmem:[%s707_s3 + $0x30] sm:$0xff]  ;;  %v142_v14 = vld [vmem:[%s707_s3 + $0x28] sm:$0xff] }
  0x21   :  { %376 = vmatpush3.msra.mxu0 %v53_v2  ;;  %383 = vmatpush3.msra.mxu1 %v151_v5  ;;  %v141_v15 = vld [vmem:[%s707_s3 + $0x20] sm:$0xff]  ;;  %v140_v16 = vld [vmem:[%s707_s3 + $0x18] sm:$0xff]  ;;  %v139_v17 = vld [vmem:[%s707_s3 + $0x10] sm:$0xff] }
  0x22   :  { %378 = vmatmul.mubr.msk.f32.vlgmr.msra.gmra.mxu0 %vm62_vm1, %v52_v3  ;;  %384 = vmatprep.subr.mxu1 %v508_v0  ;;  %v138_v18 = vld [vmem:[%s707_s3 + $0x8] sm:$0xff]  ;;  %v137_v19 = vld [vmem:[%s707_s3] sm:$0xff]  ;;  %v246_v20 = vld [vmem:[%s709_s5 + $0x78] sm:$0xff] }
  0x23   :  { %415 = vmatprep.subr.mxu0 %v508_v0  ;;  %385 = vmatpush3.msra.mxu1 %v150_v6  ;;  %v245_v21 = vld [vmem:[%s709_s5 + $0x70] sm:$0xff]  ;;  %v244_v22 = vld [vmem:[%s709_s5 + $0x68] sm:$0xff]  ;;  %v243_v23 = vld [vmem:[%s709_s5 + $0x60] sm:$0xff] }
  0x24   :  { %447 = vmatprep.mubr.msk.f32.mxu0 %vm509_vm0, %v508_v0  ;;  %386 = vmatprep.subr.mxu1 %v508_v0  ;;  %v242_v24 = vld [vmem:[%s709_s5 + $0x58] sm:$0xff]  ;;  %v241_v25 = vld [vmem:[%s709_s5 + $0x50] sm:$0xff]  ;;  %v240_v26 = vld [vmem:[%s709_s5 + $0x48] sm:$0xff] }
  0x25   :  { %387 = vmatpush3.msra.mxu1 %v149_v7  ;;  %416 = vmatpush3.msra.mxu0 %v246_v20  ;;  %v332_v27 = vld [vmem:[%s706_s2] ss:$0 sm:$0xff]  ;;  %v238_v33 = vld [vmem:[%s709_s5 + $0x38] sm:$0xff]  ;;  %v237_v34 = vld [vmem:[%s709_s5 + $0x30] sm:$0xff] }
  0x26   :  { %388 = vmatprep.subr.mxu1 %v508_v0  ;;  %417 = vmatprep.subr.mxu0 %v508_v0  ;;  %v239_v32 = vld [vmem:[%s709_s5 + $0x40] sm:$0xff]  ;;  %v236_v35 = vld [vmem:[%s709_s5 + $0x28] sm:$0xff]  ;;  %v234_v37 = vld [vmem:[%s709_s5 + $0x18] sm:$0xff] }
  0x27   :  { %389 = vmatpush3.msra.mxu1 %v148_v8  ;;  %418 = vmatpush3.msra.mxu0 %v245_v21  ;;  %v235_v36 = vld [vmem:[%s709_s5 + $0x20] sm:$0xff]  ;;  %v233_v38 = vld [vmem:[%s709_s5 + $0x10] sm:$0xff]  ;;  %v232_v39 = vld [vmem:[%s709_s5 + $0x8] sm:$0xff] }
  0x28   :  { %390 = vmatprep.subr.mxu1 %v508_v0  ;;  %419 = vmatprep.subr.mxu0 %v508_v0  ;;  %v231_v40 = vld [vmem:[%s709_s5] sm:$0xff]  ;;  %v334_v41 = vld [vmem:[#allocation4] ss:$0 sm:$0xff] }
  0x29   :  { %391 = vmatpush3.msra.mxu1 %v147_v9  ;;  %420 = vmatpush3.msra.mxu0 %v244_v22  ;;  %v335_v46 = vld [vmem:[%s710_s6] ss:$0 sm:$0xff] }
  0x2a   :  { %392 = vmatprep.subr.mxu1 %v508_v0  ;;  %421 = vmatprep.subr.mxu0 %v508_v0 }
  0x2b   :  { %393 = vmatpush3.msra.mxu1 %v146_v10  ;;  %422 = vmatpush3.msra.mxu0 %v243_v23 }
  0x2c   :  { %394 = vmatprep.subr.mxu1 %v508_v0  ;;  %423 = vmatprep.subr.mxu0 %v508_v0 }
  0x2d   :  { %395 = vmatpush3.msra.mxu1 %v145_v11  ;;  %424 = vmatpush3.msra.mxu0 %v242_v24 }
  0x2e   :  { %396 = vmatprep.subr.mxu1 %v508_v0  ;;  %425 = vmatprep.subr.mxu0 %v508_v0 }
  0x2f   :  { %397 = vmatpush3.msra.mxu1 %v144_v12  ;;  %426 = vmatpush3.msra.mxu0 %v241_v25 }
  0x30   :  { %398 = vmatprep.subr.mxu1 %v508_v0  ;;  %427 = vmatprep.subr.mxu0 %v508_v0 }
  0x31   :  { %399 = vmatpush3.msra.mxu1 %v143_v13  ;;  %428 = vmatpush3.msra.mxu0 %v240_v26 }
  0x32   :  { %400 = vmatprep.subr.mxu1 %v508_v0  ;;  %429 = vmatprep.subr.mxu0 %v508_v0 }
  0x33   :  { %401 = vmatpush3.msra.mxu1 %v142_v14  ;;  %430 = vmatpush3.msra.mxu0 %v239_v32 }
  0x34   :  { %402 = vmatprep.subr.mxu1 %v508_v0  ;;  %431 = vmatprep.subr.mxu0 %v508_v0 }
  0x35   :  { %403 = vmatpush3.msra.mxu1 %v141_v15  ;;  %432 = vmatpush3.msra.mxu0 %v238_v33 }
  0x36   :  { %404 = vmatprep.subr.mxu1 %v508_v0  ;;  %433 = vmatprep.subr.mxu0 %v508_v0 }
  0x37   :  { %405 = vmatpush3.msra.mxu1 %v140_v16  ;;  %434 = vmatpush3.msra.mxu0 %v237_v34 }
  0x38   :  { %406 = vmatprep.subr.mxu1 %v508_v0  ;;  %435 = vmatprep.subr.mxu0 %v508_v0 }
  0x39   :  { %407 = vmatpush3.msra.mxu1 %v139_v17  ;;  %436 = vmatpush3.msra.mxu0 %v236_v35 }
  0x3a   :  { %408 = vmatprep.subr.mxu1 %v508_v0  ;;  %437 = vmatprep.subr.mxu0 %v508_v0 }
  0x3b   :  { %409 = vmatpush3.msra.mxu1 %v138_v18  ;;  %438 = vmatpush3.msra.mxu0 %v235_v36 }
  0x3c   :  { %410 = vmatprep.subr.mxu1 %v508_v0  ;;  %439 = vmatprep.subr.mxu0 %v508_v0 }
  0x3d   :  { %411 = vmatpush3.msra.mxu1 %v137_v19  ;;  %440 = vmatpush3.msra.mxu0 %v234_v37 }
  0x3e   :  { %441 = vmatprep.subr.mxu0 %v508_v0 }
  0x3f   :  { %442 = vmatpush3.msra.mxu0 %v233_v38 }
  0x40   :  { %443 = vmatprep.subr.mxu0 %v508_v0 }
  0x41   :  { %444 = vmatpush3.msra.mxu0 %v232_v39 }
  0x42   :  { %445 = vmatprep.subr.mxu0 %v508_v0 }
  0x43   :  { %446 = vmatpush3.msra.mxu0 %v231_v40 }
  0xe2   :  { %v132_v28 = vpop.f32.mrf.mxu0 }
  0xe3   :  { %v133_v29 = vadd.f32 %v332_v27, %v132_v28 }
  0xe4   :  { %v379_v30 = vpop.f32.mrf.mxu0 }
  0xe5   :  { %456 = vtanh.f32 %v133_v29 }
  0xf2   :  { %v457_v31 = vpop.eup %456 }
  0xf3   :  { %413 = vmatmul.mubr.f32.vlgmr.msra.gmra.mxu1 %v457_v31 }
 0x1b3   :  { %v226_v42 = vpop.f32.mrf.mxu1 }
 0x1b4   :  { %v227_v43 = vadd.f32 %v334_v41, %v226_v42 }
 0x1b5   :  { %v414_v44 = vpop.f32.mrf.mxu1 }
 0x1b6   :  { %458 = vtanh.f32 %v227_v43 }
 0x1c3   :  { %v459_v45 = vpop.eup %458 }
 0x1c4   :  { %448 = vmatmul.mubr.f32.vlgmr.msra.gmra.mxu0 %v459_v45 }
 0x284   :  { %v320_v47 = vpop.f32.mrf.mxu0 }
 0x285   :  { %v321_v48 = vadd.f32 %v335_v46, %v320_v47 }
 0x286   :  { %v449_v49 = vpop.f32.mrf.mxu0 }
 0x287   :  { %325 = vst.msk [vmem:[%s711_s7] sm:$0xff] %vm324_vm2, %v321_v48 }
 0x288   :  { %330 = vsyncpa [#allocation3], 1 }
 0x289   :  { %331 = vsyncpa [#allocation5], 1 }

</bundles_post_ra>
